<compile_context>
chip_gen: v5e
topology: v5e:2x2
jax: 0.10.0
libtpu: 0.0.40
codegen_flags: <defaults>
</compile_context>

<pallas_src>
import functools

import jax
import jax.numpy as jnp
from jax.experimental import pallas as pl
from jax.experimental.pallas import tpu as pltpu

EPS = 1e-7
_LANES = 128
_N_STATS = 4          # rows of the per-(batch, split) partial: [bce, p*t, p, t]


def _sublane_multiple(dtype):
    """Native sublane tiling requirement: 4-byte -> 8, 2-byte -> 16, 1-byte -> 32."""
    return max(8, 32 // jnp.dtype(dtype).itemsize)


def _choose_spatial_tile(s, row_mult, bytes_per_row, budget_bytes, max_rows_cap):
    """Pick (s_tile, s_padded) for the spatial axis measured in 128-lane rows.

    Prefers the full extent (always layout-legal), then the largest layout-legal
    divisor under the VMEM budget, and finally cdiv+padding (pad corrected in the
    wrapper) so an awkward spatial size can never force an image-sized block.
    """
    max_rows = budget_bytes // bytes_per_row
    if max_rows_cap is not None:
        max_rows = min(max_rows, max_rows_cap)
    max_rows = min(max_rows, 1024)                      # diminishing returns beyond this
    max_rows = max((max_rows // row_mult) * row_mult, row_mult)
    if s <= max_rows:
        return s, s                                     # full extent, no padding
    for t in range(max_rows, 0, -row_mult):
        if s % t == 0:
            return t, s                                 # largest legal divisor
    s_pad = ((s + max_rows - 1) // max_rows) * max_rows
    return max_rows, s_pad                              # cdiv + pad


def _connected_loss_partial_kernel(pred_ref, tgt_ref, out_ref, *, num_fg):
    """Grid = (batch, spatial_split, spatial_chunk).

    pred_ref : (C, S_TILE, 128)  input dtype  one spatial chunk of one batch element
    tgt_ref  : (S_TILE, 128)     int          raw target labels (binarized in-kernel)
    out_ref  : (4, 128)          f32          per-(batch, split) lane partial sums,
                                              rows [bce, p*t, p, t]; resident across
                                              the chunk axis (index_map ignores it).
    """
    s = pl.program_id(2)

    bg = pred_ref[0]                               # (S_TILE, 128)
    fg1 = pred_ref[1]                              # channel-1 values
    fg_max = fg1
    for ch in range(2, num_fg + 1):                # unrolled VPU maximums (no XLU)
        fg_max = jnp.maximum(fg_max, pred_ref[ch])

    # argmax(channel) > 0  <=>  some foreground channel strictly beats background
    # (ties go to index 0, matching torch.argmax first-index tie-breaking).
    fg_mask = fg_max > bg
    t_pos = tgt_ref[...] > 0

    p = jnp.where(fg_mask, fg1, jnp.zeros_like(fg1)).astype(jnp.float32)
    t = t_pos.astype(jnp.float32)

    pc = jnp.clip(p, EPS, 1.0 - EPS)
    # t is binary -> a single log per element is identical to the 2-log BCE form.
    bce = -jnp.log(jnp.where(t_pos, pc, 1.0 - pc))

    # Per-chunk sublane reductions (XLU slot, idle in this kernel) -> one (4,128) slab.
    contrib = jnp.concatenate(
        [
            jnp.sum(bce, axis=0, keepdims=True),
            jnp.sum(p * t, axis=0, keepdims=True),
            jnp.sum(p, axis=0, keepdims=True),
            jnp.sum(t, axis=0, keepdims=True),
        ],
        axis=0,
    )

    @pl.when(s == 0)
    def _init():
        out_ref[...] = contrib

    @pl.when(s > 0)
    def _accumulate():
        out_ref[...] += contrib


def connected_loss(pred_out, target_mask, *, vmem_budget_bytes=20 << 20,
                   max_spatial_rows=None):
    """Base BCE+Dice term of ConnectedLoss.forward, computed in a Pallas kernel."""
    B, C, H, W = pred_out.shape
    assert C >= 2, "need a background channel plus at least one foreground channel"
    assert target_mask.shape == (B, 1, H, W)
    HW = H * W
    assert HW % _LANES == 0, "spatial extent must map to full lanes"
    S = HW // _LANES

    pred_isz = jnp.dtype(pred_out.dtype).itemsize
    tgt_isz = jnp.dtype(target_mask.dtype).itemsize
    row_mult = max(_sublane_multiple(pred_out.dtype),
                   _sublane_multiple(target_mask.dtype))
    # Double-buffered pred + target bytes per 128-lane spatial row.
    bytes_per_row = 2 * _LANES * (C * pred_isz + tgt_isz)
    S_TILE, S_PAD = _choose_spatial_tile(S, row_mult, bytes_per_row,
                                         vmem_budget_bytes, max_spatial_rows)
    NS = S_PAD // S_TILE
    # Second *parallel* axis over spatial halves: keeps both v7x TensorCores fed even
    # at B=1; a no-op for single-TC chips.
    NSPLIT = 2 if (NS % 2 == 0 and NS >= 2) else 1
    NS_PER = NS // NSPLIT

    # No wrapper-side casts / binarize: both inputs are consumed in their input dtype
    # inside the kernel (avoids extra HBM passes).
    pred4 = pred_out.reshape(B, C, S, _LANES)
    tgt3 = target_mask.reshape(B, S, _LANES)
    if S_PAD > S:
        pred4 = jnp.pad(pred4, ((0, 0), (0, 0), (0, S_PAD - S), (0, 0)))
        tgt3 = jnp.pad(tgt3, ((0, 0), (0, S_PAD - S), (0, 0)))

    kernel = functools.partial(_connected_loss_partial_kernel, num_fg=C - 1)

    need_bytes = bytes_per_row * S_TILE + 4 * _N_STATS * _LANES * 4
    vmem_limit = int(min(max(need_bytes + (8 << 20), 32 << 20), 48 << 20))

    partials = pl.pallas_call(
        kernel,
        out_shape=jax.ShapeDtypeStruct((B, NSPLIT, _N_STATS, _LANES), jnp.float32),
        grid_spec=pltpu.PrefetchScalarGridSpec(
            num_scalar_prefetch=0,
            grid=(B, NSPLIT, NS_PER),
            in_specs=[
                pl.BlockSpec((None, C, S_TILE, _LANES),
                             lambda b, h, s: (b, 0, h * NS_PER + s, 0)),
                pl.BlockSpec((None, S_TILE, _LANES),
                             lambda b, h, s: (b, h * NS_PER + s, 0)),
            ],
            out_specs=pl.BlockSpec((None, None, _N_STATS, _LANES),
                                   lambda b, h, s: (b, h, 0, 0)),
        ),
        compiler_params=pltpu.CompilerParams(
            # batch & spatial-half axes are independent (megacore-parallel on v7x);
            # the chunk axis carries the resident output accumulator.
            dimension_semantics=("parallel", "parallel", "arbitrary"),
            vmem_limit_bytes=vmem_limit,
        ),
    )(pred4, tgt3)

    # Tiny finish in plain JAX: cross-lane/split/batch reduce, BCE mean + dice.
    sums = jnp.sum(partials, axis=(0, 1, 3))        # (4,)
    bce_sum, inter, p_sum, t_sum = sums[0], sums[1], sums[2], sums[3]
    if S_PAD > S:
        # Each padded element (p = 0, t = 0) contributed exactly -log(1 - EPS) to bce.
        pad_elems = jnp.float32(B * (S_PAD - S) * _LANES)
        bce_sum = bce_sum - pad_elems * (-jnp.log(jnp.float32(1.0) - jnp.float32(EPS)))
    bce_mean = bce_sum / jnp.float32(B * HW)
    dice = 1.0 - (2.0 * inter + EPS) / (p_sum + t_sum + EPS)
    return bce_mean + dice


def connected_loss_reference(pred_out, target_mask):
    """Pure-JAX reference for the implemented part (mirrors the PyTorch math)."""
    pred_masks = jnp.argmax(pred_out, axis=1)                        # (B, H, W)
    p = pred_out[:, 1:2, :, :].astype(jnp.float32) * (pred_masks[:, None, :, :] > 0)
    t = (target_mask > 0).astype(jnp.float32)
    pc = jnp.clip(p, EPS, 1.0 - EPS)
    bce = jnp.mean(-(t * jnp.log(pc) + (1.0 - t) * jnp.log(1.0 - pc)))
    inter = jnp.sum(p * t)
    dice = 1.0 - (2.0 * inter + EPS) / (jnp.sum(p) + jnp.sum(t) + EPS)
    return bce + dice


def _check(pred_out, target_mask, **kw):
    loss = jax.block_until_ready(connected_loss(pred_out, target_mask, **kw))
    ref = jax.block_until_ready(connected_loss_reference(pred_out, target_mask))
    assert jnp.isfinite(loss), "non-finite loss"
    assert jnp.allclose(loss, ref, rtol=1e-4, atol=1e-4), (loss, ref)


if __name__ == "__main__":
    key = jax.random.PRNGKey(0)
    k1, k2, k3, k4, k5, k6 = jax.random.split(key, 6)

    # Main small test: B=2, C=4, H=W=16 (S=2, single chunk, full-extent block).
    B, C, H, W = 2, 4, 16, 16
    pred_out = jax.random.uniform(k1, (B, C, H, W), dtype=jnp.float32)
    target_mask = jax.random.randint(k2, (B, 1, H, W), 0, C, dtype=jnp.int32)
    _check(pred_out, target_mask)

    # Multi-chunk accumulation + parallel spatial split (S=64, S_TILE=16, NS=4, split=2).
    B2, C2, H2, W2 = 2, 4, 64, 128
    pred_out2 = jax.random.uniform(k3, (B2, C2, H2, W2), dtype=jnp.float32)
    target_mask2 = jax.random.randint(k4, (B2, 1, H2, W2), 0, C2, dtype=jnp.int32)
    _check(pred_out2, target_mask2, max_spatial_rows=16)

    # Padding path: S=100 has no multiple-of-8 divisor <= 64 -> padded to 128 rows.
    B3, C3, H3, W3 = 1, 3, 100, 128
    pred_out3 = jax.random.uniform(k5, (B3, C3, H3, W3), dtype=jnp.float32)
    target_mask3 = jax.random.randint(k6, (B3, 1, H3, W3), 0, C3, dtype=jnp.int32)
    _check(pred_out3, target_mask3, max_spatial_rows=64)

    print("KERNEL_OK")
</pallas_src>

<mosaic_0001>
module attributes {stable_mosaic.version = 11 : i64} {
  func.func @_connected_loss_partial_kernel(%arg0: i32, %arg1: i32, %arg2: i32, %arg3: memref<1x4x2x128xf32, #tpu.memory_space<vmem>>, %arg4: memref<1x2x128xi32, #tpu.memory_space<vmem>>, %arg5: memref<1x1x4x128xf32, #tpu.memory_space<vmem>>) attributes {dimension_semantics = [#tpu.dimension_semantics<parallel>, #tpu.dimension_semantics<parallel>, #tpu.dimension_semantics<arbitrary>], iteration_bounds = array<i64: 2, 1, 1>, scalar_prefetch = 0 : i64, scratch_operands = 0 : i64, tpu.core_type = #tpu.core_type<tc>, window_params = [{transform_indices = @transform_0, window_bounds = array<i64: 1, 4, 2, 128>}, {transform_indices = @transform_1, window_bounds = array<i64: 1, 2, 128>}, {transform_indices = @transform_2, window_bounds = array<i64: 1, 1, 4, 128>}]} {
    %c0 = arith.constant 0 : index
    %c0_0 = arith.constant 0 : index
    %c0_1 = arith.constant 0 : index
    %c0_2 = arith.constant 0 : index
    %0 = vector.load %arg3[%c0, %c0_0, %c0_1, %c0_2] : memref<1x4x2x128xf32, #tpu.memory_space<vmem>>, vector<1x1x2x128xf32>
    %1 = vector.shape_cast %0 : vector<1x1x2x128xf32> to vector<2x128xf32>
    %c0_3 = arith.constant 0 : index
    %c1 = arith.constant 1 : index
    %c0_4 = arith.constant 0 : index
    %c0_5 = arith.constant 0 : index
    %2 = vector.load %arg3[%c0_3, %c1, %c0_4, %c0_5] : memref<1x4x2x128xf32, #tpu.memory_space<vmem>>, vector<1x1x2x128xf32>
    %3 = vector.shape_cast %2 : vector<1x1x2x128xf32> to vector<2x128xf32>
    %c0_6 = arith.constant 0 : index
    %c2 = arith.constant 2 : index
    %c0_7 = arith.constant 0 : index
    %c0_8 = arith.constant 0 : index
    %4 = vector.load %arg3[%c0_6, %c2, %c0_7, %c0_8] : memref<1x4x2x128xf32, #tpu.memory_space<vmem>>, vector<1x1x2x128xf32>
    %5 = vector.shape_cast %4 : vector<1x1x2x128xf32> to vector<2x128xf32>
    %6 = arith.maximumf %3, %5 : vector<2x128xf32>
    %c0_9 = arith.constant 0 : index
    %c3 = arith.constant 3 : index
    %c0_10 = arith.constant 0 : index
    %c0_11 = arith.constant 0 : index
    %7 = vector.load %arg3[%c0_9, %c3, %c0_10, %c0_11] : memref<1x4x2x128xf32, #tpu.memory_space<vmem>>, vector<1x1x2x128xf32>
    %8 = vector.shape_cast %7 : vector<1x1x2x128xf32> to vector<2x128xf32>
    %9 = arith.maximumf %6, %8 : vector<2x128xf32>
    %10 = arith.cmpf ogt, %9, %1 : vector<2x128xf32>
    %c0_12 = arith.constant 0 : index
    %c0_13 = arith.constant 0 : index
    %c0_14 = arith.constant 0 : index
    %11 = vector.load %arg4[%c0_12, %c0_13, %c0_14] : memref<1x2x128xi32, #tpu.memory_space<vmem>>, vector<1x2x128xi32>
    %12 = vector.shape_cast %11 : vector<1x2x128xi32> to vector<2x128xi32>
    %c0_i32 = arith.constant 0 : i32
    %13 = vector.broadcast %c0_i32 : i32 to vector<2x128xi32>
    %14 = arith.cmpi sgt, %12, %13 : vector<2x128xi32>
    %cst = arith.constant 0.000000e+00 : f32
    %15 = vector.broadcast %cst : f32 to vector<2x128xf32>
    %16 = arith.select %10, %3, %15 : vector<2x128xi1>, vector<2x128xf32>
    %17 = arith.extui %14 : vector<2x128xi1> to vector<2x128xi32>
    %18 = arith.sitofp %17 : vector<2x128xi32> to vector<2x128xf32>
    %cst_15 = arith.constant 1.000000e-07 : f32
    %cst_16 = arith.constant 0.99999988 : f32
    %19 = vector.broadcast %cst_15 : f32 to vector<2x128xf32>
    %20 = arith.maximumf %19, %16 : vector<2x128xf32>
    %21 = vector.broadcast %cst_16 : f32 to vector<2x128xf32>
    %22 = arith.minimumf %21, %20 : vector<2x128xf32>
    %cst_17 = arith.constant 1.000000e+00 : f32
    %23 = vector.broadcast %cst_17 : f32 to vector<2x128xf32>
    %24 = arith.subf %23, %22 : vector<2x128xf32>
    %25 = arith.select %14, %22, %24 : vector<2x128xi1>, vector<2x128xf32>
    %26 = math.log %25 : vector<2x128xf32>
    %cst_18 = arith.constant 0.000000e+00 : f32
    %27 = vector.broadcast %cst_18 : f32 to vector<2x128xf32>
    %28 = arith.subf %27, %26 : vector<2x128xf32>
    %cst_19 = arith.constant dense<0.000000e+00> : vector<128xf32>
    %29 = vector.multi_reduction <add>, %28, %cst_19 [0] : vector<2x128xf32> to vector<128xf32>
    %30 = vector.shape_cast %29 : vector<128xf32> to vector<1x128xf32>
    %31 = arith.mulf %16, %18 : vector<2x128xf32>
    %cst_20 = arith.constant dense<0.000000e+00> : vector<128xf32>
    %32 = vector.multi_reduction <add>, %31, %cst_20 [0] : vector<2x128xf32> to vector<128xf32>
    %33 = vector.shape_cast %32 : vector<128xf32> to vector<1x128xf32>
    %cst_21 = arith.constant dense<0.000000e+00> : vector<128xf32>
    %34 = vector.multi_reduction <add>, %16, %cst_21 [0] : vector<2x128xf32> to vector<128xf32>
    %35 = vector.shape_cast %34 : vector<128xf32> to vector<1x128xf32>
    %cst_22 = arith.constant dense<0.000000e+00> : vector<128xf32>
    %36 = vector.multi_reduction <add>, %18, %cst_22 [0] : vector<2x128xf32> to vector<128xf32>
    %37 = vector.shape_cast %36 : vector<128xf32> to vector<1x128xf32>
    %38 = tpu.concatenate %30, %33, %35, %37 in 0 : vector<1x128xf32>, vector<1x128xf32>, vector<1x128xf32>, vector<1x128xf32> -> vector<4x128xf32>
    %c0_i32_23 = arith.constant 0 : i32
    %39 = arith.cmpi eq, %arg2, %c0_i32_23 : i32
    %40 = arith.extui %39 : i1 to i32
    %c0_i32_24 = arith.constant 0 : i32
    %41 = arith.cmpi ne, %40, %c0_i32_24 : i32
    scf.if %41 {
      %c0_27 = arith.constant 0 : index
      %c0_28 = arith.constant 0 : index
      %c0_29 = arith.constant 0 : index
      %c0_30 = arith.constant 0 : index
      %45 = vector.load %arg5[%c0_27, %c0_28, %c0_29, %c0_30] : memref<1x1x4x128xf32, #tpu.memory_space<vmem>>, vector<1x1x4x128xf32>
      %46 = vector.shape_cast %45 : vector<1x1x4x128xf32> to vector<4x128xf32>
      %47 = vector.shape_cast %38 : vector<4x128xf32> to vector<1x1x4x128xf32>
      tpu.vector_store %arg5[%c0_27, %c0_28, %c0_29, %c0_30], %47 {strides = array<i32>} : memref<1x1x4x128xf32, #tpu.memory_space<vmem>>, vector<1x1x4x128xf32>,
    } else {
    }
    %c0_i32_25 = arith.constant 0 : i32
    %42 = arith.cmpi sgt, %arg2, %c0_i32_25 : i32
    %43 = arith.extui %42 : i1 to i32
    %c0_i32_26 = arith.constant 0 : i32
    %44 = arith.cmpi ne, %43, %c0_i32_26 : i32
    scf.if %44 {
      %c0_27 = arith.constant 0 : index
      %c0_28 = arith.constant 0 : index
      %c0_29 = arith.constant 0 : index
      %c0_30 = arith.constant 0 : index
      %45 = vector.load %arg5[%c0_27, %c0_28, %c0_29, %c0_30] : memref<1x1x4x128xf32, #tpu.memory_space<vmem>>, vector<1x1x4x128xf32>
      %46 = vector.shape_cast %45 : vector<1x1x4x128xf32> to vector<4x128xf32>
      %47 = arith.addf %46, %38 : vector<4x128xf32>
      %c0_31 = arith.constant 0 : index
      %c0_32 = arith.constant 0 : index
      %c0_33 = arith.constant 0 : index
      %c0_34 = arith.constant 0 : index
      %48 = vector.load %arg5[%c0_31, %c0_32, %c0_33, %c0_34] : memref<1x1x4x128xf32, #tpu.memory_space<vmem>>, vector<1x1x4x128xf32>
      %49 = vector.shape_cast %48 : vector<1x1x4x128xf32> to vector<4x128xf32>
      %50 = vector.shape_cast %47 : vector<4x128xf32> to vector<1x1x4x128xf32>
      tpu.vector_store %arg5[%c0_31, %c0_32, %c0_33, %c0_34], %50 {strides = array<i32>} : memref<1x1x4x128xf32, #tpu.memory_space<vmem>>, vector<1x1x4x128xf32>,
    } else {
    }
    return
  }
  func.func @transform_0(%arg0: i32, %arg1: i32, %arg2: i32) -> (i32, i32, i32, i32) {
    %c1_i32 = arith.constant 1 : i32
    %0 = arith.muli %arg1, %c1_i32 : i32
    %1 = arith.addi %0, %arg2 : i32
    %c0_i32 = arith.constant 0 : i32
    %c0_i32_0 = arith.constant 0 : i32
    %c0_i32_1 = arith.constant 0 : i32
    return %arg0, %c0_i32, %1, %c0_i32_0 : i32, i32, i32, i32
  }
  func.func @transform_1(%arg0: i32, %arg1: i32, %arg2: i32) -> (i32, i32, i32) {
    %c1_i32 = arith.constant 1 : i32
    %0 = arith.muli %arg1, %c1_i32 : i32
    %1 = arith.addi %0, %arg2 : i32
    %c0_i32 = arith.constant 0 : i32
    %c0_i32_0 = arith.constant 0 : i32
    return %arg0, %1, %c0_i32 : i32, i32, i32
  }
  func.func @transform_2(%arg0: i32, %arg1: i32, %arg2: i32) -> (i32, i32, i32, i32) {
    %c0_i32 = arith.constant 0 : i32
    %c0_i32_0 = arith.constant 0 : i32
    %c0_i32_1 = arith.constant 0 : i32
    return %arg0, %arg1, %c0_i32, %c0_i32_0 : i32, i32, i32, i32
  }
}

</mosaic_0001>

<bundles_post_ra>
// kernel: tpu_custom_call.1
= control target key start
LH: loop header
LB: loop body
LE: loop exit
PB: predicated region body
PF: predicated region fallthrough
CT: control target
= control target key end

     0   :  { %7 = vsyncpa [#allocation3], 0  ;;  %s838_s0 = inlined_call_operand.hbm [shape: f32[2,4,2,128], index: 0, kind: input, shape index: {}]   ;;  %s839_s1 = inlined_call_operand.hbm [shape: s32[2,2,128], index: 1, kind: input, shape index: {}]   ;;  %s840_s2 = inlined_call_operand.hbm [shape: f32[2,1,4,128], index: 2, kind: output, shape index: {}]  }
   0x1   :  { %9 = vsyncpa [#allocation3 + $0x1], 0 }
   0x2   :  { %10 = vsyncpa [#allocation6], 0 }
   0x3   :  { %12 = vsyncpa [#allocation6 + $0x1], 0 }
   0x4   :  { %13 = vsyncpa [#allocation4], 0 }
   0x5   :  { %15 = vsyncpa [#allocation4 + $0x1], 0  ;;  %s694_s9 = smov 0   ;;  %s696_s10 = smov 0  }
   0x6   :  { %s698_s11 = smov 0   ;;  %s700_s12 = smov 0  }
   0x7   :  { %s702_s13 = smov 0   ;;  %s704_s14 = smov 0  }
   0x8 LB: > { %s434_s15 = sadd.s32 4294967295, %s674_s14   ;;  %s435_s16 = sadd.s32 4294967294, %s674_s14   ;;  %s674_s14 = sphi %s704_s14, %s21_s14   ;;  %s670_s13 = sphi %s702_s13, %s850_s13   ;;  %s666_s12 = sphi %s700_s12, %s849_s12   ;;  %s662_s11 = sphi %s698_s11, %s848_s11   ;;  %s658_s10 = sphi %s696_s10, %s847_s10   ;;  %s654_s9 = sphi %s694_s9, %s846_s9  }
   0x9   : > { %s40_s17 = sadd.s32 1, %s670_s13  ;;  %s51_s18 = sadd.s32 1, %s662_s11 }
   0xa   : > { %p42_p0 = scmp.ge.s32.totalorder %s40_s17, 2  ;;  %p58_p1 = scmp.ne.s32.totalorder %s662_s11, %s658_s10 }
   0xb   : > { %p59_p2 = scmp.eq.s32.totalorder %s674_s14, 0  ;;  %p64_p3 = scmp.ne.s32.totalorder %s658_s10, %s654_s9 }
   0xc   : > { %s852_s17 = smov (%p42_p0, %s40_s17), 0  ;;  %p65_p5 = scmp.eq.s32.totalorder %s434_s15, 0 }
   0xd   : > { %p735_p4 = por %p59_p2, %p58_p1  ;;  %s46_s20 = ssub.s32 %s670_s13, %s852_s17 }
   0xe   : > { %p120_p6 = scmp.eq.s32.totalorder %s434_s15, 1  ;;  %p49_p7 = scmp.eq.s32.totalorder %s46_s20, 0 }
   0xf   : > { %p741_p8 = por %p65_p5, %p64_p3  ;;  %p126_p10 = scmp.eq.s32.totalorder %s435_s16, 1 }
  0x10   : > { %p745_p9 = por %p120_p6, %p58_p1  ;;  %p437_p12 = scmp.ge.s32.totalorder %s674_s14, 2 }
  0x11   : > { %s750_s23 = scalar_select %p49_p7, %s662_s11, %s51_s18  }
  0x12   : > { %p752_p11 = por %p126_p10, %p64_p3  ;;  %p473_p13 = scmp.lt.s32.totalorder %s674_s14, 2 }
  0x13   : > { %s146_s25 = sand.u32 1, %s662_s11   ;;  %s455_s27 = sshll.u32 %s670_s13, 3 }
  0x14   : > { %s438_s26 = sshll.u32 %s146_s25, 3  ;;  %s157_s30 = scalar_lea.hbm %s838_s0, %s455_s27 }
  0x15   : > { %s150_s3 = scalar_lea.vmem [#allocation2], %s438_s26  ;;  %s158_s5 = sshll.u32 %s157_s30, 4  ;;  %s159_s5 = int_to_ptr.hbm [resolvable:$true] %s158_s5 }
  0x16   : > { %s160_s4 = sshll.u32 %s150_s3, 4  ;;  %p765_p0 = pnand %p473_p13, %p735_p4  ;;  %s161_s4 = int_to_ptr.vmem [resolvable:$true] %s160_s4 }
  0x17   : > { %p443_p1 = scmp.ge.s32.totalorder %s674_s14, 1  ;;  %s147_s7 = scalar_lea.sflag [#allocation3], %s146_s25 }
  0x18   : > { %s676_s8 = smov 32   ;;  %s677_s15 = smov 2  }
  0x19   : > { %465 = dma.hbm_to_vmem [thread:$0]  (!%p765_p0), %s159_s5, 128, %s161_s4, %s147_s7, %s676_s8, %s676_s8, %s677_s15  }
  0x1a   : > { %p189_p2 = scmp.lt.s32.totalorder %s674_s14, 3  ;;  %s441_s16 = sshll.u32 %s146_s25, 1 }
  0x1b   : > { %s442_s18 = sshll.u32 %s670_s13, 1  ;;  %s174_s27 = scalar_lea.vmem [#allocation5], %s441_s16 }
  0x1c   : > { %p190_p3 = pnand %p443_p1, %p189_p2  ;;  %s180_s19 = scalar_lea.hbm %s839_s1, %s442_s18 }
  0x1d   : > { %s184_s28 = sshll.u32 %s174_s27, 4  ;;  %s182_s29 = sshll.u32 %s180_s19, 4  ;;  %s185_s28 = int_to_ptr.vmem [resolvable:$true] %s184_s28  ;;  %s183_s29 = int_to_ptr.hbm [resolvable:$true] %s182_s29 }
  0x1e   : > { %s171_s30 = scalar_lea.sflag [#allocation6], %s146_s25  ;;  %193 = sbr.rel (%p190_p3) target bundleno = 83 (0x53), region = 28 }
  0x1f   : > { %468 = dma.hbm_to_vmem [thread:$0]  (!%p765_p0), %s183_s29, 32, %s185_s28, %s171_s30  }
  0x20   : > { %s780_s3 = sand.u32 (!%p190_p3), 1, %s658_s10  }
  0x21   : > { %s444_s4 = sshll.u32 (!%p190_p3), %s780_s3, 3  ;;  %s196_s5 = scalar_lea.sflag (!%p190_p3), [#allocation3], %s780_s3 }
  0x22   : > { %s199_s7 = scalar_lea.vmem (!%p190_p3), [#allocation2], %s444_s4 }
  0x23   : > { %641 = dma.done.wait (%p741_p8), %s196_s5, 128  }
  0x24   : > { %643 = vsyncadd (%p741_p8), %s196_s5, 4294967168  ;;  %s445_s25 = sshll.u32 %s780_s3, 1  ;;  %s206_s6 = scalar_lea.sflag [#allocation6], %s780_s3 }
  0x25   : > { %s209_s8 = scalar_lea.vmem [#allocation5], %s445_s25 }
  0x26   : > { %645 = dma.done.wait (%p741_p8), %s206_s6, 32  }
  0x27   : > { %647 = vsyncadd (%p741_p8), %s206_s6, 4294967264  ;;  %v447_v0 = vld [vmem:[%s199_s7 + $0x2] sm:$0x3]  ;;  %v448_v1 = vld [vmem:[%s199_s7 + $0x4] sm:$0x3]  ;;  %v678_v7 = vmov 0.0  }
  0x28   : > { %v243_v2 = vmax.f32 %v447_v0, %v448_v1  ;;  %v449_v3 = vld [vmem:[%s199_s7 + $0x6] sm:$0x3]  ;;  %v248_v4 = vld [vmem:[%s209_s8] sm:$0x3]  ;;  %v238_v5 = vld [vmem:[%s199_s7] sm:$0x3] }
  0x29   : > { %vm249_vm0 = vcmp.gt.s32.totalorder %v248_v4, 0  ;;  %vm260_vm2 = vcmask 1041408   ;;  %s446_s21 = sshll.u32 %s780_s3, 2  ;;  %s452_s15 = sshll.u32 %s666_s12, 2  ;;  %vm290_vm3 = vcmask 1040384   ;;  %vm293_vm4 = vcmask 1042432  }
  0x2a   : > { %v246_v6 = vmax.f32 %v243_v2, %v449_v3  ;;  %v450_v8 = vsel %vm249_vm0, 1.0, %v678_v7  ;;  %s319_s20 = scalar_lea.hbm %s840_s2, %s452_s15  ;;  %s235_s26 = scalar_lea.vmem [#allocation7], %s446_s21 }
  0x2b   : > { %v283_v17 = vsel %vm260_vm2, %v450_v8, 0.0  ;;  %s321_s19 = sshll.u32 %s235_s26, 4  ;;  %s323_s27 = sshll.u32 %s319_s20, 4  ;;  %s322_s19 = int_to_ptr.vmem [resolvable:$true] %s321_s19  ;;  %s324_s27 = int_to_ptr.hbm [resolvable:$true] %s323_s27 }
  0x2c   : > { %vm247_vm1 = vcmp.gt.f32.partialorder %v246_v6, %v238_v5  ;;  %v284_v20 = vrot.slane %v283_v17, 4  ;;  %s308_s12 = scalar_lea.sflag [#allocation4], %s780_s3  ;;  %s602_s28 = sshra.s32 %s324_s27, 4  ;;  %s603_s28 = int_to_ptr.hbm [resolvable:$true] %s602_s28 }
  0x2d   : > { %v250_v9 = vsel %vm247_vm1, %v447_v0, 0.0  ;;  %s604_s29 = scalar_lea.hbm %s603_s28, 4  ;;  %s608_s5 = scalar_lea.hbm %s840_s2, 8 }
  0x2e   : > { %v253_v10 = vmax.f32 %v250_v9, 1e-07  ;;  %v268_v11 = vmul.f32 %v450_v8, %v250_v9  ;;  %v276_v15 = vsel %vm260_vm2, %v250_v9, 0.0  ;;  %v285_v24 = vadd.f32 %v284_v20, %v283_v17  ;;  %p605_p4 = scmp.ne.s32.totalorder %s603_s28, %s604_s29  ;;  %p609_p7 = scmp.lt.s32.totalorder %s603_s28, %s840_s2 }
  0x2f   : > { %v277_v19 = vrot.slane %v276_v15, 4  ;;  %p610_p8 = scmp.lt.s32.totalorder %s608_s5, %s604_s29 }
  0x30   : > { %v254_v12 = vmin.f32 %v253_v10, 0.9999999  ;;  %v269_v14 = vsel %vm260_vm2, %v268_v11, 0.0  ;;  %v286_v29 = vrot.slane %v285_v24, 2  ;;  %p606_p5 = pnand %p605_p4, %p745_p9 }
  0x31   : > { %v270_v18 = vrot.slane %v269_v14, 4  ;;  %v278_v22 = vadd.f32 %v277_v19, %v276_v15  ;;  %p611_p10 = por %p610_p8, %p609_p7 }
  0x32   : > { %v255_v13 = vsub.f32 1.0, %v254_v12  ;;  %v287_v35 = vadd.f32 %v286_v29, %v285_v24  ;;  %p607_p6 = pneg %p606_p5 }
  0x33   : > { %v271_v21 = vadd.f32 %v270_v18, %v269_v14  ;;  %v279_v28 = vrot.slane %v278_v22, 2 }
  0x34   : > { %v256_v16 = vsel %vm249_vm0, %v254_v12, %v255_v13  ;;  %v288_v40 = vrot.slane %v287_v35, 1  ;;  %p612_p13 = pnand %p611_p10, %p607_p6 }
  0x35   : > { %526 = vlog2.f32 %v256_v16  ;;  %v272_v26 = vrot.slane %v271_v21, 2  ;;  %v280_v33 = vadd.f32 %v279_v28, %v278_v22 }
  0x36   : > { %v289_v45 = vadd.f32 %v288_v40, %v287_v35 }
  0x37   : > { %v273_v32 = vadd.f32 %v272_v26, %v271_v21  ;;  %v281_v38 = vrot.slane %v280_v33, 1 }
  0x39   : > { %v274_v37 = vrot.slane %v273_v32, 1  ;;  %v282_v43 = vadd.f32 %v281_v38, %v280_v33 }
  0x3b   : > { %v527_v23 = vpop.eup %526  ;;  %v275_v42 = vadd.f32 %v274_v37, %v273_v32 }
  0x3c   : > { %v258_v25 = vmul.f32 0.6931472, %v527_v23 }
  0x3e   : > { %v259_v27 = vsub.f32 0.0, %v258_v25 }
  0x40   : > { %v261_v30 = vsel %vm260_vm2, %v259_v27, 0.0 }
  0x41   : > { %v262_v31 = vrot.slane %v261_v30, 4 }
  0x43   : > { %v263_v34 = vadd.f32 %v262_v31, %v261_v30 }
  0x45   : > { %v264_v36 = vrot.slane %v263_v34, 2 }
  0x47   : > { %v265_v39 = vadd.f32 %v264_v36, %v263_v34 }
  0x49   : > { %v266_v41 = vrot.slane %v265_v39, 1 }
  0x4b   : > { %v267_v44 = vadd.f32 %v266_v41, %v265_v39 }
  0x4d   : > { %v291_v46 = vsel %vm290_vm3, %v267_v44, %v275_v42 }
  0x4e   : > { %v292_v47 = vsel %vm260_vm2, %v291_v46, %v282_v43 }
  0x4f   : > { %v294_v48 = vsel %vm293_vm4, %v292_v47, %v289_v45 }
  0x50   : > { %299 = vst [vmem:[%s235_s26] sm:$0xf] %v294_v48 }
  0x51   : > { %615 = shalt.err (!%p612_p13)
}
  0x52   : > { %460 = dma.vmem_to_hbm [thread:$0]  (%p745_p9), %s322_s19, 64, %s324_s27, %s308_s12  }
  0x53 PF: > { %s335_s3 = sand.u32 1, %s654_s9   ;;  %p470_p0 = pnand %p437_p12, %p752_p11 }
  0x54   : > { %s336_s6 = scalar_lea.sflag [#allocation4], %s335_s3 }
  0x55   : > { %p471_p1 = pneg %p470_p0 }
  0x57   : > { %649 = dma.done.wait (%p471_p1), %s336_s6, 64  }
  0x58   : > { %651 = vsyncadd (%p471_p1), %s336_s6, 4294967232  ;;  %s21_s14 = sadd.s32 1, %s674_s14   ;;  %s846_s9 = smov %s658_s10 }
  0x59   : > { %p18_p2 = scmp.ge.s32.totalorder %s21_s14, 4   ;;  %s847_s10 = smov %s662_s11 }
  0x5a   : > { %s848_s11 = smov %s750_s23  ;;  %s849_s12 = smov %s670_s13 }
  0x5b   : > { %s850_s13 = smov %s852_s17  ;;  %20 = sbr.rel (!%p18_p2) target bundleno = 8 (0x8), region = 97 }
  0x60   :  { %342 = vsyncpa [#allocation3], 1 }
  0x61   :  { %344 = vsyncpa [#allocation3 + $0x1], 1 }
  0x62   :  { %345 = vsyncpa [#allocation6], 1 }
  0x63   :  { %347 = vsyncpa [#allocation6 + $0x1], 1 }
  0x64   :  { %348 = vsyncpa [#allocation4], 1 }
  0x65   :  { %350 = vsyncpa [#allocation4 + $0x1], 1 }

</bundles_post_ra>
